<compile_context>
chip_gen: v6e
topology: v6e:2x2x1
jax: 0.10.0
libtpu: 0.0.40
codegen_flags: <defaults>
</compile_context>

<pallas_src>
import functools
import math

import jax
import jax.numpy as jnp
from jax.experimental import pallas as pl
from jax.experimental.pallas import tpu as pltpu

_LOG2 = math.log(2.0)


def _dipole_kernel(x_ref, pm_ref, w1_ref, b1_ref, w2t_ref, b2_ref, y_ref, *,
                   n_atoms, compute_dtype):
    # x_ref  : (bt*N, F) f32        pm_ref : (bt*N, 3) f32  (positions * mask)
    # w1_ref : (F, H)  f32          b1_ref : (1, H) f32
    # w2t_ref: (1, H)  f32  (W2^T)  b2_ref : (1,)   f32 in SMEM
    # y_ref  : (bt, 3) f32
    bt = y_ref.shape[0]

    # ---- hidden layer: Dense(F -> H) on the MXU, f32 accumulation ----------
    xv = x_ref[...].astype(compute_dtype)          # optional bf16 cast (VPU)
    w1 = w1_ref[...].astype(compute_dtype)
    h = jnp.dot(xv, w1, preferred_element_type=jnp.float32) + b1_ref[...]
    # numerically stable shifted_softplus(x) = softplus(x) - log(2), f32 EUP
    h = (jnp.maximum(h, 0.0) + jnp.log1p(jnp.exp(-jnp.abs(h)))
         - jnp.float32(_LOG2))                                  # (bt*N, H)

    # ---- output layer Dense(H -> 1): VPU multiply + XLU lane reduce --------
    # (an (bt*N, H) x (H, 1) MXU matmul would use 1 of 128/256 columns and is
    #  pure push/pop latency; VPU/XLU slots are idle here, so this is free.)
    q = jnp.sum(h * w2t_ref[...], axis=-1, keepdims=True) + b2_ref[0]  # (bt*N, 1)

    # ---- dipole: per-molecule sum over atoms of (R * mask) * q -------------
    yi = pm_ref[...] * q                                        # (bt*N, 3)
    y_ref[...] = jnp.sum(yi.reshape(bt, n_atoms, 3), axis=1)    # (bt, 3)


def _round_up(v, m):
    return -(-v // m) * m


def _choose_block_batch(B, N, F, H, block_budget_bytes=32 << 20):
    """Molecules per grid step + padded batch, with an honest VMEM budget.

    Counts what actually lands in VMEM (f32, lanes padded to 128, double
    buffering on the two streamed inputs, h/q/yi intermediates), not just the
    x tile.  Constraints:
      * out block (bt, 3): bt % 8 == 0 or bt == padded B   ((8,128) rule)
      * >= 2 grid steps for B >= 16, >= 8 for B >= 64 (megacore / pipelining)
      * prefer blocks that divide B (padding x costs an extra HBM pass)
    """
    lane_f = _round_up(max(F, 1), 128)
    lane_h = _round_up(max(H, 1), 128)
    per_mol = 4 * N * (2 * lane_f        # x block, double buffered
                       + 2 * 128         # (positions*mask) block, dbl buffered
                       + lane_h          # h intermediate
                       + 3 * 128)        # q / yi / misc lane-padded temps
    bt = max(1, block_budget_bytes // per_mol)
    if B >= 64:
        bt = min(bt, max(8, B // 8))
    elif B >= 16:
        bt = min(bt, B // 2)
    if bt >= B:
        return B, B                      # whole batch in one block (grid == 1)
    bt = max(8, bt - bt % 8)
    if B % bt:
        lo = max(8, (bt // 2) - (bt // 2) % 8)
        # smallest zero-padding wins; exact divisors win outright; ties -> larger bt
        bt = min(range(bt, lo - 1, -8),
                 key=lambda c: (_round_up(B, c) - B, -c))
    return bt, _round_up(B, bt)


def dipole_moment(x, positions, atom_mask, w1, b1, w2, b2, *,
                  compute_dtype=jnp.float32):
    """x: [B,N,F], positions: [B,N,3], atom_mask: [B,N] -> dipole [B,3] f32.

    w1: [F,H], b1: [H], w2: [H,1], b2: [1].  N is ideally a multiple of 8
    (sublane-aligned per-molecule reduction); other N still works.
    """
    B, N, F = x.shape
    H = w1.shape[1]
    bt, b_pad = _choose_block_batch(B, N, F, H)
    grid = (b_pad // bt,)

    # x consumed at its native f32 width (no separate convert pass over the
    # dominant operand); free row-major metadata reshape to (B*N, F).
    x2d = x.reshape(B * N, F).astype(jnp.float32)
    # Fold the atom mask into the positions once (R*q*mask == (R*mask)*q):
    # removes the mask block + DMA from the kernel at ~16 B/atom wrapper cost.
    pm2d = (positions.astype(jnp.float32)
            * atom_mask.astype(jnp.float32)[:, :, None]).reshape(B * N, 3)
    if b_pad != B:
        pad_rows = (b_pad - B) * N       # zero pm rows -> zero contribution
        x2d = jnp.pad(x2d, ((0, pad_rows), (0, 0)))
        pm2d = jnp.pad(pm2d, ((0, pad_rows), (0, 0)))

    w1_f = w1.astype(jnp.float32)
    b1_r = b1.reshape(1, H).astype(jnp.float32)
    w2_t = w2.reshape(1, H).astype(jnp.float32)   # transposed row (VPU path)
    b2_s = b2.reshape(1).astype(jnp.float32)      # SMEM scalar

    kernel = functools.partial(_dipole_kernel, n_atoms=N,
                               compute_dtype=compute_dtype)

    grid_spec = pltpu.PrefetchScalarGridSpec(
        num_scalar_prefetch=0,
        grid=grid,
        in_specs=[
            pl.BlockSpec((bt * N, F), lambda b: (b, 0)),        # representation
            pl.BlockSpec((bt * N, 3), lambda b: (b, 0)),        # positions*mask
            pl.BlockSpec((F, H), lambda b: (0, 0)),             # W1 (resident)
            pl.BlockSpec((1, H), lambda b: (0, 0)),             # b1
            pl.BlockSpec((1, H), lambda b: (0, 0)),             # W2^T
            pl.BlockSpec(memory_space=pltpu.MemorySpace.SMEM),  # b2 scalar
        ],
        out_specs=pl.BlockSpec((bt, 3), lambda b: (b, 0)),
    )

    def _nbytes(a):
        return a.size * a.dtype.itemsize

    cost = pl.CostEstimate(
        flops=2 * b_pad * N * F * H + 4 * b_pad * N * H + 9 * b_pad * N,
        transcendentals=2 * b_pad * N * H,
        bytes_accessed=(_nbytes(x2d) + _nbytes(pm2d) + _nbytes(w1_f)
                        + _nbytes(b1_r) + _nbytes(w2_t) + _nbytes(b2_s)
                        + b_pad * 3 * 4),
    )

    y = pl.pallas_call(
        kernel,
        out_shape=jax.ShapeDtypeStruct((b_pad, 3), jnp.float32),
        grid_spec=grid_spec,
        compiler_params=pltpu.CompilerParams(
            dimension_semantics=("parallel",),
            # explicit: < v7x 64 MiB physical with headroom, well under the
            # 128 MiB of v5e/v6e; blocks are budgeted to ~32 MiB above.
            vmem_limit_bytes=48 << 20,
        ),
        cost_estimate=cost,
    )(x2d, pm2d, w1_f, b1_r, w2_t, b2_s)

    return y[:B] if b_pad != B else y


def _reference(x, positions, atom_mask, w1, b1, w2, b2):
    hp = jax.lax.Precision.HIGHEST
    h = jnp.einsum("bnf,fh->bnh", x, w1, precision=hp) + b1
    h = jnp.logaddexp(h, 0.0) - jnp.log(2.0)
    q = jnp.einsum("bnh,ho->bno", h, w2, precision=hp) + b2
    yi = positions * q * atom_mask[:, :, None]
    return jnp.sum(yi, axis=1)


if __name__ == "__main__":
    key = jax.random.PRNGKey(0)
    B, N, F = 16, 8, 32          # molecules, atoms (multiple of 8), features
    H = F // 2                   # pyramidal MLP hidden width (n_layers=2)
    ks = jax.random.split(key, 8)

    x = jax.random.normal(ks[0], (B, N, F), dtype=jnp.float32)
    positions = jax.random.normal(ks[1], (B, N, 3), dtype=jnp.float32)
    atom_mask = jnp.ones((B, N), dtype=jnp.float32)
    atom_mask = atom_mask.at[1, -2:].set(0.0)
    atom_mask = atom_mask.at[-1, -3:].set(0.0)

    w1 = jax.random.normal(ks[2], (F, H), dtype=jnp.float32) * 0.1
    b1 = jax.random.normal(ks[3], (H,), dtype=jnp.float32) * 0.05
    w2 = jax.random.normal(ks[4], (H, 1), dtype=jnp.float32) * 0.1
    b2 = jax.random.normal(ks[5], (1,), dtype=jnp.float32) * 0.05

    y = jax.block_until_ready(
        dipole_moment(x, positions, atom_mask, w1, b1, w2, b2))
    y_ref = _reference(x, positions, atom_mask, w1, b1, w2, b2)
    assert y.shape == (B, 3)
    # tolerance covers possible MXU bf16-pass rounding of the default-precision
    # f32 matmul; everything else in the kernel is exact f32.
    assert jnp.allclose(y, y_ref, atol=1e-2, rtol=1e-2)

    # Awkward batch: exercises multiple-of-8 blocking + zero-mask padding
    # fallback (B=20 -> bt=8, padded to 24, grid length 3).
    B2 = 20
    x2 = jax.random.normal(ks[6], (B2, N, F), dtype=jnp.float32)
    pos2 = jax.random.normal(ks[7], (B2, N, 3), dtype=jnp.float32)
    mask2 = jnp.ones((B2, N), dtype=jnp.float32).at[0, -1:].set(0.0)
    y2 = jax.block_until_ready(
        dipole_moment(x2, pos2, mask2, w1, b1, w2, b2))
    y2_ref = _reference(x2, pos2, mask2, w1, b1, w2, b2)
    assert y2.shape == (B2, 3)
    assert jnp.allclose(y2, y2_ref, atol=1e-2, rtol=1e-2)

    print("KERNEL_OK")
</pallas_src>

<mosaic_0001>
module attributes {stable_mosaic.version = 11 : i64} {
  func.func @_dipole_kernel(%arg0: i32, %arg1: memref<64x32xf32, #tpu.memory_space<vmem>>, %arg2: memref<64x3xf32, #tpu.memory_space<vmem>>, %arg3: memref<32x16xf32, #tpu.memory_space<vmem>>, %arg4: memref<1x16xf32, #tpu.memory_space<vmem>>, %arg5: memref<1x16xf32, #tpu.memory_space<vmem>>, %arg6: memref<1xf32, #tpu.memory_space<smem>>, %arg7: memref<8x3xf32, #tpu.memory_space<vmem>>) attributes {dimension_semantics = [#tpu.dimension_semantics<parallel>], iteration_bounds = array<i64: 2>, scalar_prefetch = 0 : i64, scratch_operands = 0 : i64, tpu.core_type = #tpu.core_type<tc>, window_params = [{transform_indices = @transform_0, window_bounds = array<i64: 64, 32>}, {transform_indices = @transform_1, window_bounds = array<i64: 64, 3>}, {pipeline_mode = #tpu.pipeline_mode<synchronous>, transform_indices = @transform_2, window_bounds = array<i64: 32, 16>}, {pipeline_mode = #tpu.pipeline_mode<synchronous>, transform_indices = @transform_3, window_bounds = array<i64: 1, 16>}, {pipeline_mode = #tpu.pipeline_mode<synchronous>, transform_indices = @transform_4, window_bounds = array<i64: 1, 16>}, {transform_indices = @transform_5, window_bounds = array<i64: 1>}, {transform_indices = @transform_6, window_bounds = array<i64: 8, 3>}]} {
    %c0 = arith.constant 0 : index
    %c0_0 = arith.constant 0 : index
    %0 = vector.load %arg1[%c0, %c0_0] : memref<64x32xf32, #tpu.memory_space<vmem>>, vector<64x32xf32>
    %c0_1 = arith.constant 0 : index
    %c0_2 = arith.constant 0 : index
    %1 = vector.load %arg3[%c0_1, %c0_2] : memref<32x16xf32, #tpu.memory_space<vmem>>, vector<32x16xf32>
    %cst = arith.constant dense<0.000000e+00> : vector<64x16xf32>
    %2 = tpu.matmul %0, %1, %cst {dimension_numbers = #tpu.dot_dimension_numbers<[1], [0], [0], [1], [0, 0, 1, 1], [], []>} : vector<64x32xf32>, vector<32x16xf32>, vector<64x16xf32> -> vector<64x16xf32>
    %c0_3 = arith.constant 0 : index
    %c0_4 = arith.constant 0 : index
    %3 = vector.load %arg4[%c0_3, %c0_4] : memref<1x16xf32, #tpu.memory_space<vmem>>, vector<1x16xf32>
    %4 = vector.broadcast %3 : vector<1x16xf32> to vector<64x16xf32>
    %5 = arith.addf %2, %4 : vector<64x16xf32>
    %cst_5 = arith.constant 0.000000e+00 : f32
    %6 = vector.broadcast %cst_5 : f32 to vector<64x16xf32>
    %7 = arith.maximumf %5, %6 : vector<64x16xf32>
    %8 = math.absf %5 : vector<64x16xf32>
    %cst_6 = arith.constant 0.000000e+00 : f32
    %9 = vector.broadcast %cst_6 : f32 to vector<64x16xf32>
    %10 = arith.subf %9, %8 : vector<64x16xf32>
    %11 = math.exp %10 : vector<64x16xf32>
    %12 = math.log1p %11 : vector<64x16xf32>
    %13 = arith.addf %7, %12 : vector<64x16xf32>
    %cst_7 = arith.constant 0.693147182 : f32
    %14 = vector.broadcast %cst_7 : f32 to vector<64x16xf32>
    %15 = arith.subf %13, %14 : vector<64x16xf32>
    %c0_8 = arith.constant 0 : index
    %c0_9 = arith.constant 0 : index
    %16 = vector.load %arg5[%c0_8, %c0_9] : memref<1x16xf32, #tpu.memory_space<vmem>>, vector<1x16xf32>
    %17 = vector.broadcast %16 : vector<1x16xf32> to vector<64x16xf32>
    %18 = arith.mulf %15, %17 : vector<64x16xf32>
    %cst_10 = arith.constant dense<0.000000e+00> : vector<64xf32>
    %19 = vector.multi_reduction <add>, %18, %cst_10 [1] : vector<64x16xf32> to vector<64xf32>
    %20 = vector.shape_cast %19 : vector<64xf32> to vector<64x1xf32>
    %c0_11 = arith.constant 0 : index
    %21 = memref.load %arg6[%c0_11] : memref<1xf32, #tpu.memory_space<smem>>
    %22 = vector.broadcast %21 : f32 to vector<64x1xf32>
    %23 = arith.addf %20, %22 : vector<64x1xf32>
    %c0_12 = arith.constant 0 : index
    %c0_13 = arith.constant 0 : index
    %24 = vector.load %arg2[%c0_12, %c0_13] : memref<64x3xf32, #tpu.memory_space<vmem>>, vector<64x3xf32>
    %25 = vector.broadcast %23 : vector<64x1xf32> to vector<64x3xf32>
    %26 = arith.mulf %24, %25 : vector<64x3xf32>
    %27 = vector.shape_cast %26 : vector<64x3xf32> to vector<8x8x3xf32>
    %cst_14 = arith.constant dense<0.000000e+00> : vector<8x3xf32>
    %28 = vector.multi_reduction <add>, %27, %cst_14 [1] : vector<8x8x3xf32> to vector<8x3xf32>
    %c0_15 = arith.constant 0 : index
    %c0_16 = arith.constant 0 : index
    %29 = vector.load %arg7[%c0_15, %c0_16] : memref<8x3xf32, #tpu.memory_space<vmem>>, vector<8x3xf32>
    tpu.vector_store %arg7[%c0_15, %c0_16], %28 {strides = array<i32>} : memref<8x3xf32, #tpu.memory_space<vmem>>, vector<8x3xf32>,
    return
  }
  func.func @transform_0(%arg0: i32) -> (i32, i32) {
    %c0_i32 = arith.constant 0 : i32
    %c0_i32_0 = arith.constant 0 : i32
    return %arg0, %c0_i32 : i32, i32
  }
  func.func @transform_1(%arg0: i32) -> (i32, i32) {
    %c0_i32 = arith.constant 0 : i32
    %c0_i32_0 = arith.constant 0 : i32
    return %arg0, %c0_i32 : i32, i32
  }
  func.func @transform_2(%arg0: i32) -> (i32, i32) {
    %c0_i32 = arith.constant 0 : i32
    %c0_i32_0 = arith.constant 0 : i32
    %c0_i32_1 = arith.constant 0 : i32
    return %c0_i32, %c0_i32_0 : i32, i32
  }
  func.func @transform_3(%arg0: i32) -> (i32, i32) {
    %c0_i32 = arith.constant 0 : i32
    %c0_i32_0 = arith.constant 0 : i32
    %c0_i32_1 = arith.constant 0 : i32
    return %c0_i32, %c0_i32_0 : i32, i32
  }
  func.func @transform_4(%arg0: i32) -> (i32, i32) {
    %c0_i32 = arith.constant 0 : i32
    %c0_i32_0 = arith.constant 0 : i32
    %c0_i32_1 = arith.constant 0 : i32
    return %c0_i32, %c0_i32_0 : i32, i32
  }
  func.func @transform_5(%arg0: i32) -> i32 {
    %c0_i32 = arith.constant 0 : i32
    %c0_i32_0 = arith.constant 0 : i32
    return %c0_i32 : i32
  }
  func.func @transform_6(%arg0: i32) -> (i32, i32) {
    %c0_i32 = arith.constant 0 : i32
    %c0_i32_0 = arith.constant 0 : i32
    return %arg0, %c0_i32 : i32, i32
  }
}

</mosaic_0001>

<bundles_post_ra>
// kernel: tpu_custom_call.1
= control target key start
LH: loop header
LB: loop body
LE: loop exit
PB: predicated region body
PF: predicated region fallthrough
CT: control target
= control target key end

     0   :  { %s920_s23 = smov 0   ;;  %s1097_s0 = inlined_call_operand.vmem [shape: f32[128,32], index: 0, kind: input, shape index: {}]   ;;  %s1098_s1 = inlined_call_operand.vmem [shape: f32[128,3], index: 1, kind: input, shape index: {}]   ;;  %s1099_s2 = inlined_call_operand.vmem [shape: f32[32,16], index: 2, kind: input, shape index: {}]   ;;  %s1100_s3 = inlined_call_operand.vmem [shape: f32[1,16], index: 3, kind: input, shape index: {}]   ;;  %s1101_s4 = inlined_call_operand.vmem [shape: f32[1,16], index: 4, kind: input, shape index: {}]   ;;  %s1102_s5 = inlined_call_operand.<no memory space> [shape: f32[1], index: 5, kind: input, shape index: {}]   ;;  %s1103_s6 = inlined_call_operand.vmem [shape: f32[16,3], index: 6, kind: output, shape index: {}]  }
   0x1   :  { %11 = sst [smem:[#allocation2]] %s1102_s5 }
   0x2 LB: > { %s926_s24 = sadd.s32 4294967295, %s880_s23   ;;  %p768_p0 = scmp.ge.s32.totalorder %s880_s23, 1  ;;  %s880_s23 = sphi %s920_s23, %s17_s23  }
   0x3   : > { %p225_p1 = scmp.lt.s32.totalorder %s880_s23, 3 }
   0x5   : > { %p226_p2 = pnand %p768_p0, %p225_p1 }
   0x6   : > { %s769_s28 = sshll.u32 (!%p226_p2), %s926_s24, 3  ;;  %s592_s17 = sld [smem:[#allocation2]] (!%p226_p2) }
   0x7   : > { %229 = sbr.rel (%p226_p2) target bundleno = 442 (0x1ba), region = 44  ;;  %p260_p3 = scmp.lt.s32.totalorder (!%p226_p2), %s769_s28, 15 }
   0x8   : > { %p271_p4 = scmp.lt.s32.totalorder (!%p226_p2), %s926_s24, 1 }
   0xc   : > { %v286_v0 = vld [vmem:[%s1099_s2 + $0x18] sm:$0xff]  ;;  %v285_v1 = vld [vmem:[%s1099_s2 + $0x10] sm:$0xff]  ;;  %v284_v2 = vld [vmem:[%s1099_s2 + $0x8] sm:$0xff]  ;;  %s1111_s28 = smov (!%p260_p3, %s769_s28), 15  ;;  %vm294_vm0 = vcmask 261120   ;;  %vm567_vm1 = vcmask 130048  }
   0xd   : > { %806 = vmatprep.subr.mxu0 %v286_v0  ;;  %826 = vmatprep.subr.mxu1 %v286_v0  ;;  %v283_v3 = vld [vmem:[%s1099_s2] sm:$0xff]  ;;  %s770_s9 = sshll.u32 %s1111_s28, 3  ;;  %vm618_vm10 = vcmask 23552   ;;  %vm683_vm11 = vcmask 1041409   ;;  %vm685_vm12 = vcmask 1042434   ;;  %vm687_vm13 = vcmask 1043459  }
   0xe   : > { %807 = vmatpush3.msra.mxu0 %v286_v0  ;;  %830 = vmatpush3.msra.mxu1 %v286_v0  ;;  %s263_s12 = scalar_lea.vmem %s1097_s0, %s770_s9  ;;  %v774_v12 = vld [vmem:[%s1100_s3] ss:$0 sm:$0xff]  ;;  %s1067_s20 = scalar_lea.vmem %s1098_s1, %s770_s9  ;;  %vm689_vm14 = vcmask 1044484   ;;  %vm691_vm15 = vcmask 1045509  }
   0xf   : > { %808 = vmatprep.subr.mxu0 %v285_v1  ;;  %827 = vmatprep.subr.mxu1 %v285_v1  ;;  %v275_v4 = vld [vmem:[%s263_s12] sm:$0xff]  ;;  %v276_v6 = vld [vmem:[%s263_s12 + $0x8] sm:$0xff]  ;;  %v277_v8 = vld [vmem:[%s263_s12 + $0x10] sm:$0xff]  ;;  %s1113_s24 = smov (!%p271_p4, %s926_s24), 1 }
  0x10   : > { %809 = vmatpush3.msra.mxu0 %v285_v1  ;;  %831 = vmatpush3.msra.mxu1 %v285_v1  ;;  %v279_v5 = vld [vmem:[%s263_s12 + $0x20] sm:$0xff]  ;;  %v280_v7 = vld [vmem:[%s263_s12 + $0x28] sm:$0xff]  ;;  %v281_v9 = vld [vmem:[%s263_s12 + $0x30] sm:$0xff]  ;;  %s773_s21 = sshll.u32 %s1113_s24, 3 }
  0x11   : > { %810 = vmatprep.subr.mxu0 %v284_v2  ;;  %828 = vmatprep.subr.mxu1 %v284_v2  ;;  %v278_v10 = vld [vmem:[%s263_s12 + $0x18] sm:$0xff]  ;;  %s274_s26 = scalar_lea.vmem %s1103_s6, %s773_s21 }
  0x12   : > { %811 = vmatpush3.msra.mxu0 %v284_v2  ;;  %832 = vmatpush3.msra.mxu1 %v284_v2  ;;  %v282_v11 = vld [vmem:[%s263_s12 + $0x38] sm:$0xff] }
  0x13   : > { %812 = vmatprep.subr.mxu0 %v283_v3  ;;  %829 = vmatprep.subr.mxu1 %v283_v3 }
  0x14   : > { %813 = vmatpush3.msra.mxu0 %v283_v3  ;;  %833 = vmatpush3.msra.mxu1 %v283_v3 }
  0x15   : > { %814 = vmatprep.mubr.msk.f32.mxu0 %vm294_vm0, %v275_v4  ;;  %820 = vmatprep.mubr.msk.f32.mxu1 %vm294_vm0, %v279_v5 }
  0x16   : > { %815 = vmatmul.mubr.msk.f32.vlgmr.msra.gmra.mxu0 %vm294_vm0, %v276_v6  ;;  %821 = vmatmul.mubr.msk.f32.vlgmr.msra.gmra.mxu1 %vm294_vm0, %v280_v7 }
  0x17   : > { %817 = vmatprep.mubr.msk.f32.mxu0 %vm294_vm0, %v277_v8  ;;  %823 = vmatprep.mubr.msk.f32.mxu1 %vm294_vm0, %v281_v9 }
  0x1a   : > { %818 = vmatmul.mubr.msk.f32.gmra.mxu0 %vm294_vm0, %v278_v10  ;;  %824 = vmatmul.mubr.msk.f32.gmra.mxu1 %vm294_vm0, %v282_v11  ;;  %vm693_vm0 = vcmask 1046534  }
  0xd6   : > { %v816_v13 = vpop.f32.mrf.mxu0  ;;  %v822_v14 = vpop.f32.mrf.mxu1 }
  0xd7   : > { %v962_v15 = vadd.f32 %v816_v13, %v774_v12  ;;  %v964_v16 = vadd.f32 %v822_v14, %v774_v12 }
  0xd8   : > { %v385_v17 = vpop.f32.mrf.mxu0  ;;  %v405_v18 = vpop.f32.mrf.mxu1 }
  0xd9   : > { %v433_v19 = vand.u32 2147483647, %v962_v15  ;;  %v437_v20 = vand.u32 2147483647, %v964_v16  ;;  %v968_v21 = vadd.f32 %v774_v12, %v385_v17  ;;  %v970_v22 = vadd.f32 %v774_v12, %v405_v18 }
  0xda   : > { %v819_v23 = vpop.f32.mrf.mxu0  ;;  %v825_v24 = vpop.f32.mrf.mxu1 }
  0xdb   : > { %v441_v25 = vsub.f32 0.0, %v433_v19  ;;  %v445_v26 = vsub.f32 0.0, %v437_v20  ;;  %v972_v27 = vadd.f32 %v819_v23, %v774_v12  ;;  %v974_v28 = vadd.f32 %v825_v24, %v774_v12 }
  0xdc   : > { %v432_v29 = vand.u32 2147483647, %v968_v21  ;;  %v436_v30 = vand.u32 2147483647, %v970_v22  ;;  %v395_v31 = vpop.f32.mrf.mxu0  ;;  %v415_v32 = vpop.f32.mrf.mxu1  ;;  %v424_v13 = vmax.f32 %v968_v21, 0.0  ;;  %v428_v23 = vmax.f32 %v970_v22, 0.0 }
  0xdd   : > { %v450_v33 = vmul.f32 1.442695, %v441_v25  ;;  %v458_v34 = vmul.f32 1.442695, %v445_v26  ;;  %v435_v37 = vand.u32 2147483647, %v972_v27  ;;  %v980_v39 = vadd.f32 %v774_v12, %v395_v31 }
  0xde   : > { %v440_v35 = vsub.f32 0.0, %v432_v29  ;;  %v444_v36 = vsub.f32 0.0, %v436_v30  ;;  %v439_v38 = vand.u32 2147483647, %v974_v28  ;;  %v982_v40 = vadd.f32 %v774_v12, %v415_v32 }
  0xdf   : > { %842 = vpow2.f32 %v450_v33  ;;  %v443_v43 = vsub.f32 0.0, %v435_v37  ;;  %v434_v45 = vand.u32 2147483647, %v980_v39  ;;  %v425_v12 = vmax.f32 %v962_v15, 0.0 }
  0xe0   : > { %v448_v41 = vmul.f32 1.442695, %v440_v35  ;;  %v456_v42 = vmul.f32 1.442695, %v444_v36  ;;  %844 = vpow2.f32 %v458_v34  ;;  %v447_v44 = vsub.f32 0.0, %v439_v38 }
  0xe1   : > { %v454_v46 = vmul.f32 1.442695, %v443_v43  ;;  %v438_v47 = vand.u32 2147483647, %v982_v40  ;;  %v442_v49 = vsub.f32 0.0, %v434_v45  ;;  %v427_v24 = vmax.f32 %v972_v27, 0.0 }
  0xe2   : > { %846 = vpow2.f32 %v448_v41  ;;  %v462_v48 = vmul.f32 1.442695, %v447_v44  ;;  %v426_v15 = vmax.f32 %v980_v39, 0.0  ;;  %v430_v21 = vmax.f32 %v982_v40, 0.0 }
  0xe3   : > { %848 = vpow2.f32 %v456_v42  ;;  %v446_v50 = vsub.f32 0.0, %v438_v47  ;;  %v452_v51 = vmul.f32 1.442695, %v442_v49 }
  0xe4   : > { %850 = vpow2.f32 %v462_v48 }
  0xe5   : > { %852 = vpow2.f32 %v454_v46  ;;  %v460_v52 = vmul.f32 1.442695, %v446_v50  ;;  %v1025_v46 = vld [vmem:[%s1101_s4] ss:$0 sm:$0xff] }
  0xe6   : > { %854 = vpow2.f32 %v452_v51 }
  0xe7   : > { %856 = vpow2.f32 %v460_v52 }
  0xec   : > { %v843_v53 = vpop.eup %842 }
  0xed   : > { %v473_v54 = vadd.f32 1.0, %v843_v53  ;;  %v845_v55 = vpop.eup %844  ;;  %v476_v3 = vmul.f32 -0.5, %v843_v53  ;;  %v479_v11 = vand.u32 2147483647, %v843_v53 }
  0xee   : > { %v509_v59 = vadd.f32 1.0, %v845_v55  ;;  %v512_v4 = vmul.f32 -0.5, %v845_v55  ;;  %v515_v19 = vand.u32 2147483647, %v845_v55 }
  0xef   : > { %v847_v56 = vpop.eup %846  ;;  %858 = vlog2.f32 %v473_v54  ;;  %v477_v9 = vadd.f32 1.0, %v476_v3  ;;  %vm480_vm2 = vcmp.lt.f32.partialorder %v479_v11, 0.0004427343 }
  0xf0   : > { %v849_v57 = vpop.eup %848  ;;  %v464_v58 = vadd.f32 1.0, %v847_v56  ;;  %v467_v6 = vmul.f32 -0.5, %v847_v56  ;;  %v513_v10 = vadd.f32 1.0, %v512_v4  ;;  %v470_v14 = vand.u32 2147483647, %v847_v56 }
  0xf1   : > { %v500_v60 = vadd.f32 1.0, %v849_v57  ;;  %v986_v61 = vpop.eup %850  ;;  %v503_v8 = vmul.f32 -0.5, %v849_v57  ;;  %v506_v17 = vand.u32 2147483647, %v849_v57  ;;  %v478_v30 = vmul.f32 %v843_v53, %v477_v9 }
  0xf2   : > { %860 = vlog2.f32 %v464_v58  ;;  %v988_v62 = vpop.eup %852  ;;  %v527_v0 = vadd.f32 1.0, %v986_v61  ;;  %v468_v20 = vadd.f32 1.0, %v467_v6  ;;  %v1003_v31 = vmul.f32 %v845_v55, %v513_v10 }
  0xf3   : > { %862 = vlog2.f32 %v500_v60  ;;  %v990_v63 = vpop.eup %854  ;;  %v491_v7 = vadd.f32 1.0, %v988_v62  ;;  %v504_v25 = vadd.f32 1.0, %v503_v8  ;;  %vm1007_vm3 = vcmp.lt.f32.partialorder %v470_v14, 0.0004427343 }
  0xf4   : > { %v993_v1 = vpop.eup %856  ;;  %864 = vlog2.f32 %v509_v59  ;;  %v482_v2 = vadd.f32 1.0, %v990_v63  ;;  %v485_v26 = vmul.f32 -0.5, %v990_v63  ;;  %vm1011_vm4 = vcmp.lt.f32.partialorder %v506_v17, 0.0004427343 }
  0xf5   : > { %v518_v5 = vadd.f32 1.0, %v993_v1  ;;  %v521_v34 = vmul.f32 -0.5, %v993_v1  ;;  %vm1016_vm5 = vcmp.lt.f32.partialorder %v515_v19, 0.0004427343  ;;  %v469_v39 = vmul.f32 %v847_v56, %v468_v20 }
  0xf6   : > { %866 = vlog2.f32 %v482_v2  ;;  %v494_v41 = vmul.f32 -0.5, %v988_v62  ;;  %v505_v43 = vmul.f32 %v849_v57, %v504_v25  ;;  %v530_v44 = vmul.f32 -0.5, %v986_v61 }
  0xf7   : > { %868 = vlog2.f32 %v527_v0  ;;  %v486_v45 = vadd.f32 1.0, %v485_v26  ;;  %v533_v49 = vand.u32 2147483647, %v986_v61  ;;  %v488_v50 = vand.u32 2147483647, %v990_v63 }
  0xf8   : > { %870 = vlog2.f32 %v518_v5  ;;  %v522_v54 = vadd.f32 1.0, %v521_v34  ;;  %v524_v55 = vand.u32 2147483647, %v993_v1  ;;  %v495_v59 = vadd.f32 1.0, %v494_v41 }
  0xf9   : > { %872 = vlog2.f32 %v491_v7  ;;  %v497_v60 = vand.u32 2147483647, %v988_v62  ;;  %v487_v4 = vmul.f32 %v990_v63, %v486_v45  ;;  %v531_v7 = vadd.f32 1.0, %v530_v44  ;;  %v603_v45 = vld [vmem:[%s1067_s20 + $0x8] sm:$0xff] }
  0xfa   : > { %vm489_vm6 = vcmp.lt.f32.partialorder %v488_v50, 0.0004427343  ;;  %vm525_vm7 = vcmp.lt.f32.partialorder %v524_v55, 0.0004427343  ;;  %vm534_vm9 = vcmp.lt.f32.partialorder %v533_v49, 0.0004427343  ;;  %v593_v44 = vstv %s592_s17 }
  0xfb   : > { %vm498_vm8 = vcmp.lt.f32.partialorder %v497_v60, 0.0004427343  ;;  %v602_v49 = vld [vmem:[%s1067_s20] sm:$0xff]  ;;  %v605_v60 = vld [vmem:[%s1067_s20 + $0x18] sm:$0xff] }
  0xfc   : > { %v859_v18 = vpop.eup %858 }
  0xfd   : > { %v475_v29 = vmul.f32 0.6931472, %v859_v18  ;;  %v496_v18 = vmul.f32 %v988_v62, %v495_v59  ;;  %v532_v62 = vmul.f32 %v986_v61, %v531_v7 }
  0xff   : > { %v861_v32 = vpop.eup %860  ;;  %v481_v35 = vsel %vm480_vm2, %v478_v30, %v475_v29  ;;  %v429_v30 = vmax.f32 %v964_v16, 0.0 }
 0x100   : > { %v863_v36 = vpop.eup %862  ;;  %v466_v38 = vmul.f32 0.6931472, %v861_v32  ;;  %v537_v40 = vadd.f32 %v481_v35, %v425_v12 }
 0x101   : > { %v502_v42 = vmul.f32 0.6931472, %v863_v36  ;;  %v865_v47 = vpop.eup %864  ;;  %v431_v36 = vmax.f32 %v974_v28, 0.0 }
 0x102   : > { %v472_v48 = vsel %vm1007_vm3, %v469_v39, %v466_v38  ;;  %v784_v51 = vadd.f32 -0.6931472, %v537_v40  ;;  %v511_v2 = vmul.f32 0.6931472, %v865_v47 }
 0x103   : > { %v536_v52 = vadd.f32 %v472_v48, %v424_v13  ;;  %v508_v53 = vsel %vm1011_vm4, %v505_v43, %v502_v42  ;;  %v867_v56 = vpop.eup %866  ;;  %v523_v13 = vmul.f32 %v993_v1, %v522_v54  ;;  %v606_v54 = vld [vmem:[%s1067_s20 + $0x20] sm:$0xff] }
 0x104   : > { %v540_v57 = vadd.f32 %v508_v53, %v428_v23  ;;  %v560_v58 = vmul.f32 %v1025_v46, %v784_v51  ;;  %v869_v0 = vpop.eup %868  ;;  %v484_v3 = vmul.f32 0.6931472, %v867_v56  ;;  %v517_v63 = vsel %vm1016_vm5, %v1003_v31, %v511_v2 }
 0x105   : > { %v783_v5 = vadd.f32 -0.6931472, %v536_v52  ;;  %v871_v6 = vpop.eup %870  ;;  %v529_v19 = vmul.f32 0.6931472, %v869_v0  ;;  %v541_v22 = vadd.f32 %v517_v63, %v429_v30 }
 0x106   : > { %v571_v8 = vsel %vm567_vm1, %v560_v58, 0.0  ;;  %v787_v9 = vadd.f32 -0.6931472, %v540_v57  ;;  %v873_v10 = vpop.eup %872  ;;  %v490_v11 = vsel %vm489_vm6, %v487_v4, %v484_v3  ;;  %v520_v12 = vmul.f32 0.6931472, %v871_v6 }
 0x107   : > { %572 = vadd.xlane.f32.xlu0 %v571_v8  ;;  %v559_v14 = vmul.f32 %v1025_v46, %v783_v5  ;;  %v493_v17 = vmul.f32 0.6931472, %v873_v10  ;;  %v538_v20 = vadd.f32 %v490_v11, %v426_v15  ;;  %v535_v34 = vsel %vm534_vm9, %v532_v62, %v529_v19  ;;  %v608_v5 = vld [vmem:[%s1067_s20 + $0x30] sm:$0xff] }
 0x108   : > { %v526_v23 = vsel %vm525_vm7, %v523_v13, %v520_v12  ;;  %v563_v1 = vmul.f32 %v1025_v46, %v787_v9  ;;  %v543_v27 = vadd.f32 %v535_v34, %v431_v36  ;;  %v788_v37 = vadd.f32 -0.6931472, %v541_v22  ;;  %v604_v13 = vld [vmem:[%s1067_s20 + $0x10] sm:$0xff] }
 0x109   : > { %v542_v25 = vadd.f32 %v526_v23, %v430_v21  ;;  %v499_v26 = vsel %vm498_vm8, %v496_v18, %v493_v17  ;;  %v568_v29 = vsel %vm567_vm1, %v559_v14, 0.0  ;;  %v785_v15 = vadd.f32 -0.6931472, %v538_v20 }
 0x10a   : > { %v539_v32 = vadd.f32 %v499_v26, %v427_v24  ;;  %v580_v21 = vsel %vm567_vm1, %v563_v1, 0.0  ;;  %v564_v40 = vmul.f32 %v1025_v46, %v788_v37  ;;  %v790_v41 = vadd.f32 -0.6931472, %v543_v27 }
 0x10b   : > { %569 = vadd.xlane.f32.xlu0 %v568_v29  ;;  %v789_v33 = vadd.f32 -0.6931472, %v542_v25  ;;  %v561_v61 = vmul.f32 %v1025_v46, %v785_v15 }
 0x10c   : > { %v786_v31 = vadd.f32 -0.6931472, %v539_v32  ;;  %v583_v28 = vsel %vm567_vm1, %v564_v40, 0.0  ;;  %v566_v42 = vmul.f32 %v1025_v46, %v790_v41  ;;  %v607_v32 = vld [vmem:[%s1067_s20 + $0x28] sm:$0xff] }
 0x10d   : > { %v565_v35 = vmul.f32 %v1025_v46, %v789_v33  ;;  %v574_v39 = vsel %vm567_vm1, %v561_v61, 0.0 }
 0x10e   : > { %v562_v16 = vmul.f32 %v1025_v46, %v786_v31  ;;  %v589_v43 = vsel %vm567_vm1, %v566_v42, 0.0 }
 0x10f   : > { %581 = vadd.xlane.f32.xlu0 %v580_v21  ;;  %v586_v38 = vsel %vm567_vm1, %v565_v35, 0.0 }
 0x110   : > { %v577_v24 = vsel %vm567_vm1, %v562_v16, 0.0  ;;  %vm695_vm1 = vcmask 1047559  }
 0x111   : > { %578 = vadd.xlane.f32.xlu1 %v577_v24  ;;  %v609_v24 = vld [vmem:[%s1067_s20 + $0x38] sm:$0xff] }
 0x113   : > { %587 = vadd.xlane.f32.xlu0 %v586_v38 }
 0x115   : > { %575 = vadd.xlane.f32.xlu1 %v574_v39 }
 0x119   : > { %584 = vadd.xlane.f32.xlu1 %v583_v28 }
 0x11d   : > { %590 = vadd.xlane.f32.xlu1 %v589_v43 }
 0x190   : > { %v573_v47 = vpop.xlane.xlu0 %572 }
 0x191   : > { %v595_v48 = vadd.f32 %v593_v44, %v573_v47 }
 0x193   : > { %v611_v46 = vmul.f32 %v603_v45, %v595_v48 }
 0x194   : > { %v570_v50 = vpop.xlane.xlu0 %569 }
 0x195   : > { %v594_v51 = vadd.f32 %v593_v44, %v570_v50  ;;  %v626_v52 = vsel %vm618_vm10, %v611_v46, 0.0 }
 0x196   : > { %v627_v58 = vrot.slane %v626_v52, 4 }
 0x197   : > { %v610_v53 = vmul.f32 %v602_v49, %v594_v51 }
 0x198   : > { %v582_v55 = vpop.xlane.xlu0 %581  ;;  %v628_v9 = vadd.f32 %v627_v58, %v626_v52 }
 0x199   : > { %v619_v56 = vsel %vm618_vm10, %v610_v53, 0.0  ;;  %v598_v57 = vadd.f32 %v593_v44, %v582_v55 }
 0x19a   : > { %v620_v59 = vrot.slane %v619_v56, 4  ;;  %v579_v0 = vpop.xlane.xlu1 %578  ;;  %v629_v25 = vrot.slane %v628_v9, 2 }
 0x19b   : > { %v614_v2 = vmul.f32 %v606_v54, %v598_v57  ;;  %v597_v3 = vadd.f32 %v593_v44, %v579_v0 }
 0x19c   : > { %v621_v4 = vadd.f32 %v620_v59, %v619_v56  ;;  %v588_v6 = vpop.xlane.xlu0 %587  ;;  %v630_v35 = vadd.f32 %v629_v25, %v628_v9 }
 0x19d   : > { %v647_v7 = vsel %vm618_vm10, %v614_v2, 0.0  ;;  %v600_v8 = vadd.f32 %v593_v44, %v588_v6  ;;  %v613_v10 = vmul.f32 %v605_v60, %v597_v3 }
 0x19e   : > { %v648_v11 = vrot.slane %v647_v7, 4  ;;  %v622_v12 = vrot.slane %v621_v4, 2  ;;  %v576_v14 = vpop.xlane.xlu1 %575  ;;  %v631_v43 = vrot.slane %v630_v35, 1 }
 0x19f   : > { %v616_v17 = vmul.f32 %v608_v5, %v600_v8  ;;  %v640_v18 = vsel %vm618_vm10, %v613_v10, 0.0  ;;  %v596_v63 = vadd.f32 %v593_v44, %v576_v14 }
 0x1a0   : > { %v641_v19 = vrot.slane %v640_v18, 4  ;;  %v649_v20 = vadd.f32 %v648_v11, %v647_v7  ;;  %v623_v30 = vadd.f32 %v622_v12, %v621_v4  ;;  %v632_v55 = vadd.f32 %v631_v43, %v630_v35 }
 0x1a1   : > { %v661_v23 = vsel %vm618_vm10, %v616_v17, 0.0  ;;  %v612_v26 = vmul.f32 %v604_v13, %v596_v63 }
 0x1a2   : > { %v662_v29 = vrot.slane %v661_v23, 4  ;;  %v642_v1 = vadd.f32 %v641_v19, %v640_v18  ;;  %v585_v62 = vpop.xlane.xlu1 %584  ;;  %v650_v21 = vrot.slane %v649_v20, 2  ;;  %v624_v16 = vrot.slane %v623_v30, 1 }
 0x1a3   : > { %v633_v33 = vsel %vm618_vm10, %v612_v26, 0.0  ;;  %v599_v22 = vadd.f32 %v593_v44, %v585_v62 }
 0x1a4   : > { %v663_v31 = vadd.f32 %v662_v29, %v661_v23  ;;  %v643_v15 = vrot.slane %v642_v1, 2  ;;  %v634_v34 = vrot.slane %v633_v33, 4  ;;  %v651_v28 = vadd.f32 %v650_v21, %v649_v20 }
 0x1a5   : > { %v615_v36 = vmul.f32 %v607_v32, %v599_v22  ;;  %v625_v49 = vadd.f32 %v624_v16, %v623_v30 }
 0x1a6   : > { %v635_v27 = vadd.f32 %v634_v34, %v633_v33  ;;  %v591_v61 = vpop.xlane.xlu1 %590  ;;  %v644_v37 = vadd.f32 %v643_v15, %v642_v1  ;;  %v664_v39 = vrot.slane %v663_v31, 2  ;;  %v652_v53 = vrot.slane %v651_v28, 1 }
 0x1a7   : > { %v654_v38 = vsel %vm618_vm10, %v615_v36, 0.0  ;;  %v601_v40 = vadd.f32 %v593_v44, %v591_v61  ;;  %v684_v60 = vsel %vm683_vm11, %v632_v55, %v625_v49 }
 0x1a8   : > { %v636_v41 = vrot.slane %v635_v27, 2  ;;  %v655_v42 = vrot.slane %v654_v38, 4  ;;  %v645_v46 = vrot.slane %v644_v37, 1  ;;  %v665_v50 = vadd.f32 %v664_v39, %v663_v31 }
 0x1a9   : > { %v617_v45 = vmul.f32 %v609_v24, %v601_v40  ;;  %v653_v3 = vadd.f32 %v652_v53, %v651_v28 }
 0x1aa   : > { %v637_v47 = vadd.f32 %v636_v41, %v635_v27  ;;  %v656_v48 = vadd.f32 %v655_v42, %v654_v38  ;;  %v646_v59 = vadd.f32 %v645_v46, %v644_v37  ;;  %v666_v0 = vrot.slane %v665_v50, 1 }
 0x1ab   : > { %v668_v51 = vsel %vm618_vm10, %v617_v45, 0.0 }
 0x1ac   : > { %v638_v52 = vrot.slane %v637_v47, 1  ;;  %v657_v54 = vrot.slane %v656_v48, 2  ;;  %v669_v44 = vrot.slane %v668_v51, 4  ;;  %v667_v10 = vadd.f32 %v666_v0, %v665_v50 }
 0x1ae   : > { %v639_v56 = vadd.f32 %v638_v52, %v637_v47  ;;  %v658_v57 = vadd.f32 %v657_v54, %v656_v48  ;;  %v670_v58 = vadd.f32 %v669_v44, %v668_v51 }
 0x1b0   : > { %v686_v2 = vsel %vm685_vm12, %v639_v56, %v684_v60  ;;  %v659_v4 = vrot.slane %v658_v57, 1  ;;  %v671_v5 = vrot.slane %v670_v58, 2 }
 0x1b1   : > { %v688_v6 = vsel %vm687_vm13, %v646_v59, %v686_v2 }
 0x1b2   : > { %v690_v7 = vsel %vm689_vm14, %v653_v3, %v688_v6  ;;  %v660_v8 = vadd.f32 %v659_v4, %v658_v57  ;;  %v672_v9 = vadd.f32 %v671_v5, %v670_v58 }
 0x1b4   : > { %v692_v11 = vsel %vm691_vm15, %v660_v8, %v690_v7  ;;  %v673_v12 = vrot.slane %v672_v9, 1 }
 0x1b5   : > { %v694_v14 = vsel %vm693_vm0, %v667_v10, %v692_v11 }
 0x1b6   : > { %v674_v13 = vadd.f32 %v673_v12, %v672_v9 }
 0x1b8   : > { %v696_v17 = vsel %vm695_vm1, %v674_v13, %v694_v14 }
 0x1b9   : > { %698 = vst.msk [vmem:[%s274_s26] sm:$0xff] %vm618_vm10, %v696_v17 }
 0x1ba PF: > { %s17_s23 = sadd.s32 1, %s880_s23  }
 0x1bb   : > { %p14_p5 = scmp.ge.s32.totalorder %s17_s23, 4  }
 0x1bd   :  { %16 = sbr.rel (!%p14_p5) target bundleno = 2 (0x2), region = 77 }

</bundles_post_ra>
